<compile_context>
chip_gen: v7x
topology: tpu7x:2x2x1
jax: 0.10.0
libtpu: 0.0.40
codegen_flags: <defaults>
</compile_context>

<pallas_src>
import functools

import jax
import jax.numpy as jnp
from jax.experimental import pallas as pl
from jax.experimental.pallas import tpu as pltpu


def _cdiv(a, b):
    return (a + b - 1) // b


def _round_up(x, m):
    return ((x + m - 1) // m) * m


def _mlp_kernel(x_ref, w1_ref, b1_ref, w2_ref, b2_ref, w3_ref, b3_ref, o_ref,
                *, block_rows, in_size, out_size, pack_in, pack_out):
    """3-layer MLP on one row tile. Matmuls hit the MXU with f32 accumulation."""
    x = x_ref[...]
    if pack_in:
        # Input streamed as a lane-dense (block_rows*in_size/128, 128) slab
        # (contiguous row-major view of (block_rows, in_size)); unpack in VMEM.
        x = x.reshape(block_rows, in_size)

    h1 = jnp.dot(x, w1_ref[...], preferred_element_type=jnp.float32) + b1_ref[...]
    h1 = jnp.maximum(h1, 0.0)

    h2 = jnp.dot(h1, w2_ref[...], preferred_element_type=jnp.float32) + b2_ref[...]
    h2 = jnp.maximum(h2, 0.0)

    out = jnp.dot(h2, w3_ref[...], preferred_element_type=jnp.float32) + b3_ref[...]

    if pack_out:
        # Lane-dense store: (block_rows, out_size) -> (block_rows*out_size/128, 128).
        # Avoids masked vst.msk stores and the 16x lane-padded writeback DMA.
        out = out.reshape(block_rows * out_size // 128, 128)

    o_ref[...] = out.astype(o_ref.dtype)


@functools.partial(jax.jit, static_argnames=("block_rows", "pack_in", "pack_out"))
def _forward_impl(x, w1, b1, w2, b2, w3, b3, *, block_rows, pack_in, pack_out):
    rows, in_size = x.shape
    hid = w1.shape[1]
    out_size = w3.shape[1]
    br = block_rows
    grid = (pl.cdiv(rows, br),)   # ragged last block is clipped on writeback.

    # Biases as (1, F) so they broadcast over the row tile in-kernel.
    b1r = b1.reshape(1, hid)
    b2r = b2.reshape(1, hid)
    b3r = b3.reshape(1, out_size)

    if pack_in:
        # Free (contiguous, row-major) reinterpretation -> dense 128-lane input DMA.
        x_in = x.reshape(rows * in_size // 128, 128)
        x_spec = pl.BlockSpec((br * in_size // 128, 128), lambda i: (i, 0))
    else:
        x_in = x
        x_spec = pl.BlockSpec((br, in_size), lambda i: (i, 0))

    if pack_out:
        pack = 128 // out_size                 # logical rows per packed output row
        p_rows = pl.cdiv(rows * out_size, 128)
        out_shape = jax.ShapeDtypeStruct((p_rows, 128), x.dtype)
        out_spec = pl.BlockSpec((br * out_size // 128, 128), lambda i: (i, 0))
    else:
        out_shape = jax.ShapeDtypeStruct((rows, out_size), x.dtype)
        out_spec = pl.BlockSpec((br, out_size), lambda i: (i, 0))

    kernel = functools.partial(
        _mlp_kernel, block_rows=br, in_size=in_size, out_size=out_size,
        pack_in=pack_in, pack_out=pack_out)

    # Memory-bound hint for XLA's scheduler (streamed activations dominate).
    flops = 2 * rows * (in_size * hid + hid * hid + hid * out_size)
    bytes_accessed = (rows * (in_size + out_size) * x.dtype.itemsize
                      + (w1.size + b1.size + w2.size + b2.size + w3.size + b3.size)
                      * w1.dtype.itemsize)

    out = pl.pallas_call(
        kernel,
        out_shape=out_shape,
        grid_spec=pltpu.PrefetchScalarGridSpec(
            num_scalar_prefetch=0,
            grid=grid,
            in_specs=[
                # Streaming activation tile (double-buffered by Pallas).
                x_spec,
                # Weights/biases: constant block index -> VMEM-resident across steps.
                pl.BlockSpec((in_size, hid), lambda i: (0, 0)),
                pl.BlockSpec((1, hid), lambda i: (0, 0)),
                pl.BlockSpec((hid, hid), lambda i: (0, 0)),
                pl.BlockSpec((1, hid), lambda i: (0, 0)),
                pl.BlockSpec((hid, out_size), lambda i: (0, 0)),
                pl.BlockSpec((1, out_size), lambda i: (0, 0)),
            ],
            out_specs=out_spec,
        ),
        compiler_params=pltpu.CompilerParams(
            dimension_semantics=("parallel",),
            # Padded-footprint accounting: lane-padded fallback at br=1024 is ~2-4 MiB
            # (x/out blocks pad to 128 lanes); packed variants are ~8-16x smaller.
            # 32 MiB is safe on v5e/v6e (128 MiB physical) and v7x (64 MiB physical).
            vmem_limit_bytes=32 * 1024 * 1024,
        ),
        cost_estimate=pl.CostEstimate(
            flops=flops, transcendentals=0, bytes_accessed=bytes_accessed),
    )(x_in, w1, b1r, w2, b2r, w3, b3r)

    if pack_out:
        pack = 128 // out_size
        out = out.reshape(out.shape[0] * pack, out_size)  # contiguous reinterpretation
        if out.shape[0] != rows:
            out = out[:rows]                              # drop ragged-tail junk rows
    return out


@functools.lru_cache(maxsize=None)
def _packing_supported(br, in_size, hid, out_size, x_dtype, w_dtype, pack_in, pack_out):
    """One-time compile/run probe for the lane-dense (packed) kernel variants.

    The packing needs an in-kernel minor-dim reshape ((br, F) <-> (br*F/128, 128))
    whose Mosaic lowering support varies across releases; probe once with the exact
    block shapes of the real call and cache the answer.
    """
    try:
        xd = jnp.dtype(x_dtype)
        wd = jnp.dtype(w_dtype)
        x = jnp.zeros((br, in_size), xd)
        w1 = jnp.zeros((in_size, hid), wd)
        b1 = jnp.zeros((hid,), wd)
        w2 = jnp.zeros((hid, hid), wd)
        b2 = jnp.zeros((hid,), wd)
        w3 = jnp.zeros((hid, out_size), wd)
        b3 = jnp.zeros((out_size,), wd)
        jax.block_until_ready(
            _forward_impl(x, w1, b1, w2, b2, w3, b3,
                          block_rows=br, pack_in=pack_in, pack_out=pack_out))
        return True
    except Exception:
        return False


def _choose_packing(br, rows, in_size, hid, out_size, x_dtype, w_dtype):
    can_in = (in_size <= 128 and 128 % in_size == 0
              and rows % (128 // in_size) == 0 and br % (128 // in_size) == 0)
    can_out = (out_size <= 128 and 128 % out_size == 0 and br % (128 // out_size) == 0)
    xs, ws = str(jnp.dtype(x_dtype)), str(jnp.dtype(w_dtype))
    tried = set()
    # Preference ladder: fully dense -> dense output only (biggest single lever,
    # mandatory-priority on v5e's single store slot) -> dense input only -> fallback.
    for pi, po in ((can_in, can_out), (False, can_out), (can_in, False), (False, False)):
        if (pi, po) in tried:
            continue
        tried.add((pi, po))
        if not (pi or po):
            return False, False
        if _packing_supported(br, in_size, hid, out_size, xs, ws, pi, po):
            return pi, po
    return False, False


def _pick_block_rows(rows, block_rows):
    """Row-tile size: >= ~6 grid steps (>=3 per TC on dual-TC v7x) for pipeline depth
    and megacore balance, but never below ~512 rows (>= ~85% of HBM roofline); tiny
    inputs collapse to a single block. Keep it a multiple of 16 so the lane-dense
    output packing (128/out_size = 16 rows per packed row) stays legal."""
    block_rows = max(16, _round_up(block_rows, 16))
    rows16 = _round_up(rows, 16)
    br = min(block_rows, _round_up(_cdiv(rows, 6), 16))
    br = max(br, min(512, rows16))
    return min(br, rows16)


def relational_model_forward(m, params, block_rows=1024):
    """Applies the 3-layer MLP over the last axis of `m`.

    m: [..., input_size]   (any leading dims; flattened to rows internally).
       bf16 input is supported and halves streamed HBM traffic; accumulation is
       always f32 and the output dtype matches m.dtype.
    params: dict with w1,b1,w2,b2,w3,b3 (w stored [in, out]).
    block_rows: sweepable row-tile size.
    """
    w1, b1 = params["w1"], params["b1"]
    w2, b2 = params["w2"], params["b2"]
    w3, b3 = params["w3"], params["b3"]

    in_size, hid = w1.shape
    out_size = w3.shape[1]

    lead_shape = m.shape[:-1]
    x = m.reshape(-1, in_size)
    rows = x.shape[0]

    br = _pick_block_rows(rows, block_rows)
    pack_in, pack_out = _choose_packing(br, rows, in_size, hid, out_size,
                                        x.dtype, w1.dtype)

    out = _forward_impl(x, w1, b1, w2, b2, w3, b3,
                        block_rows=br, pack_in=pack_in, pack_out=pack_out)
    return out.reshape(*lead_shape, out_size)


def init_params(key, input_size, output_size, hidden_size, dtype=jnp.float32):
    """Deterministic synthetic init (PyTorch-Linear-style uniform bounds)."""
    ks = jax.random.split(key, 6)

    def lin(kw, kb, fan_in, fan_out):
        bound = 1.0 / (fan_in ** 0.5)
        w = jax.random.uniform(kw, (fan_in, fan_out), dtype, -bound, bound)
        b = jax.random.uniform(kb, (fan_out,), dtype, -bound, bound)
        return w, b

    w1, b1 = lin(ks[0], ks[1], input_size, hidden_size)
    w2, b2 = lin(ks[2], ks[3], hidden_size, hidden_size)
    w3, b3 = lin(ks[4], ks[5], hidden_size, output_size)
    return {"w1": w1, "b1": b1, "w2": w2, "b2": b2, "w3": w3, "b3": b3}


def reference_forward(m, params):
    x = jnp.maximum(m @ params["w1"] + params["b1"], 0.0)
    x = jnp.maximum(x @ params["w2"] + params["b2"], 0.0)
    return x @ params["w3"] + params["b3"]


if __name__ == "__main__":
    input_size, hidden_size, output_size = 16, 32, 8

    key = jax.random.PRNGKey(0)
    kp, kx1, kx2, kx3 = jax.random.split(key, 4)
    params = init_params(kp, input_size, output_size, hidden_size)

    # Case 1: small relational input [batch, n_object_pairs, input_size] -> single block.
    m1 = jax.random.normal(kx1, (2, 64, input_size), jnp.float32)
    out1 = jax.block_until_ready(relational_model_forward(m1, params))
    ref1 = reference_forward(m1, params)
    assert out1.shape == (2, 64, output_size)
    assert jnp.allclose(out1, ref1, atol=1e-5, rtol=1e-5)

    # Case 2: multi-block grid with a ragged last block (rows=4000 -> ~6 steps of 672).
    m2 = jax.random.normal(kx2, (4, 1000, input_size), jnp.float32)
    out2 = jax.block_until_ready(relational_model_forward(m2, params))
    ref2 = reference_forward(m2, params)
    assert out2.shape == (4, 1000, output_size)
    assert jnp.allclose(out2, ref2, atol=1e-5, rtol=1e-5)

    # Case 3: bf16 activations (halves streamed HBM bytes; f32 accumulation inside).
    m3 = jax.random.normal(kx3, (3, 40, input_size), jnp.float32).astype(jnp.bfloat16)
    out3 = jax.block_until_ready(relational_model_forward(m3, params))
    ref3 = reference_forward(m3.astype(jnp.float32), params)
    assert out3.shape == (3, 40, output_size)
    assert jnp.allclose(out3.astype(jnp.float32), ref3, atol=5e-2, rtol=5e-2)

    print("KERNEL_OK")
</pallas_src>

<mosaic_0001>
module attributes {stable_mosaic.version = 11 : i64} {
  func.func @_mlp_kernel(%arg0: i32, %arg1: memref<16x128xf32, #tpu.memory_space<vmem>>, %arg2: memref<16x32xf32, #tpu.memory_space<vmem>>, %arg3: memref<1x32xf32, #tpu.memory_space<vmem>>, %arg4: memref<32x32xf32, #tpu.memory_space<vmem>>, %arg5: memref<1x32xf32, #tpu.memory_space<vmem>>, %arg6: memref<32x8xf32, #tpu.memory_space<vmem>>, %arg7: memref<1x8xf32, #tpu.memory_space<vmem>>, %arg8: memref<8x128xf32, #tpu.memory_space<vmem>>) attributes {dimension_semantics = [#tpu.dimension_semantics<parallel>], iteration_bounds = array<i64: 1>, scalar_prefetch = 0 : i64, scratch_operands = 0 : i64, tpu.core_type = #tpu.core_type<tc>, window_params = [{transform_indices = @transform_0, window_bounds = array<i64: 16, 128>}, {pipeline_mode = #tpu.pipeline_mode<synchronous>, transform_indices = @transform_1, window_bounds = array<i64: 16, 32>}, {pipeline_mode = #tpu.pipeline_mode<synchronous>, transform_indices = @transform_2, window_bounds = array<i64: 1, 32>}, {pipeline_mode = #tpu.pipeline_mode<synchronous>, transform_indices = @transform_3, window_bounds = array<i64: 32, 32>}, {pipeline_mode = #tpu.pipeline_mode<synchronous>, transform_indices = @transform_4, window_bounds = array<i64: 1, 32>}, {pipeline_mode = #tpu.pipeline_mode<synchronous>, transform_indices = @transform_5, window_bounds = array<i64: 32, 8>}, {pipeline_mode = #tpu.pipeline_mode<synchronous>, transform_indices = @transform_6, window_bounds = array<i64: 1, 8>}, {transform_indices = @transform_7, window_bounds = array<i64: 8, 128>}]} {
    %c0 = arith.constant 0 : index
    %c0_0 = arith.constant 0 : index
    %0 = vector.load %arg1[%c0, %c0_0] : memref<16x128xf32, #tpu.memory_space<vmem>>, vector<16x128xf32>
    %1 = vector.shape_cast %0 : vector<16x128xf32> to vector<128x16xf32>
    %c0_1 = arith.constant 0 : index
    %c0_2 = arith.constant 0 : index
    %2 = vector.load %arg2[%c0_1, %c0_2] : memref<16x32xf32, #tpu.memory_space<vmem>>, vector<16x32xf32>
    %cst = arith.constant dense<0.000000e+00> : vector<128x32xf32>
    %3 = tpu.matmul %1, %2, %cst {dimension_numbers = #tpu.dot_dimension_numbers<[1], [0], [0], [1], [0, 0, 1, 1], [], []>} : vector<128x16xf32>, vector<16x32xf32>, vector<128x32xf32> -> vector<128x32xf32>
    %c0_3 = arith.constant 0 : index
    %c0_4 = arith.constant 0 : index
    %4 = vector.load %arg3[%c0_3, %c0_4] : memref<1x32xf32, #tpu.memory_space<vmem>>, vector<1x32xf32>
    %5 = vector.broadcast %4 : vector<1x32xf32> to vector<128x32xf32>
    %6 = arith.addf %3, %5 : vector<128x32xf32>
    %cst_5 = arith.constant 0.000000e+00 : f32
    %7 = vector.broadcast %cst_5 : f32 to vector<128x32xf32>
    %8 = arith.maximumf %6, %7 : vector<128x32xf32>
    %c0_6 = arith.constant 0 : index
    %c0_7 = arith.constant 0 : index
    %9 = vector.load %arg4[%c0_6, %c0_7] : memref<32x32xf32, #tpu.memory_space<vmem>>, vector<32x32xf32>
    %cst_8 = arith.constant dense<0.000000e+00> : vector<128x32xf32>
    %10 = tpu.matmul %8, %9, %cst_8 {dimension_numbers = #tpu.dot_dimension_numbers<[1], [0], [0], [1], [0, 0, 1, 1], [], []>} : vector<128x32xf32>, vector<32x32xf32>, vector<128x32xf32> -> vector<128x32xf32>
    %c0_9 = arith.constant 0 : index
    %c0_10 = arith.constant 0 : index
    %11 = vector.load %arg5[%c0_9, %c0_10] : memref<1x32xf32, #tpu.memory_space<vmem>>, vector<1x32xf32>
    %12 = vector.broadcast %11 : vector<1x32xf32> to vector<128x32xf32>
    %13 = arith.addf %10, %12 : vector<128x32xf32>
    %cst_11 = arith.constant 0.000000e+00 : f32
    %14 = vector.broadcast %cst_11 : f32 to vector<128x32xf32>
    %15 = arith.maximumf %13, %14 : vector<128x32xf32>
    %c0_12 = arith.constant 0 : index
    %c0_13 = arith.constant 0 : index
    %16 = vector.load %arg6[%c0_12, %c0_13] : memref<32x8xf32, #tpu.memory_space<vmem>>, vector<32x8xf32>
    %cst_14 = arith.constant dense<0.000000e+00> : vector<128x8xf32>
    %17 = tpu.matmul %15, %16, %cst_14 {dimension_numbers = #tpu.dot_dimension_numbers<[1], [0], [0], [1], [0, 0, 1, 1], [], []>} : vector<128x32xf32>, vector<32x8xf32>, vector<128x8xf32> -> vector<128x8xf32>
    %c0_15 = arith.constant 0 : index
    %c0_16 = arith.constant 0 : index
    %18 = vector.load %arg7[%c0_15, %c0_16] : memref<1x8xf32, #tpu.memory_space<vmem>>, vector<1x8xf32>
    %19 = vector.broadcast %18 : vector<1x8xf32> to vector<128x8xf32>
    %20 = arith.addf %17, %19 : vector<128x8xf32>
    %21 = vector.shape_cast %20 : vector<128x8xf32> to vector<8x128xf32>
    %c0_17 = arith.constant 0 : index
    %c0_18 = arith.constant 0 : index
    %22 = vector.load %arg8[%c0_17, %c0_18] : memref<8x128xf32, #tpu.memory_space<vmem>>, vector<8x128xf32>
    tpu.vector_store %arg8[%c0_17, %c0_18], %21 {strides = array<i32>} : memref<8x128xf32, #tpu.memory_space<vmem>>, vector<8x128xf32>,
    return
  }
  func.func @transform_0(%arg0: i32) -> (i32, i32) {
    %c0_i32 = arith.constant 0 : i32
    %c0_i32_0 = arith.constant 0 : i32
    return %arg0, %c0_i32 : i32, i32
  }
  func.func @transform_1(%arg0: i32) -> (i32, i32) {
    %c0_i32 = arith.constant 0 : i32
    %c0_i32_0 = arith.constant 0 : i32
    %c0_i32_1 = arith.constant 0 : i32
    return %c0_i32, %c0_i32_0 : i32, i32
  }
  func.func @transform_2(%arg0: i32) -> (i32, i32) {
    %c0_i32 = arith.constant 0 : i32
    %c0_i32_0 = arith.constant 0 : i32
    %c0_i32_1 = arith.constant 0 : i32
    return %c0_i32, %c0_i32_0 : i32, i32
  }
  func.func @transform_3(%arg0: i32) -> (i32, i32) {
    %c0_i32 = arith.constant 0 : i32
    %c0_i32_0 = arith.constant 0 : i32
    %c0_i32_1 = arith.constant 0 : i32
    return %c0_i32, %c0_i32_0 : i32, i32
  }
  func.func @transform_4(%arg0: i32) -> (i32, i32) {
    %c0_i32 = arith.constant 0 : i32
    %c0_i32_0 = arith.constant 0 : i32
    %c0_i32_1 = arith.constant 0 : i32
    return %c0_i32, %c0_i32_0 : i32, i32
  }
  func.func @transform_5(%arg0: i32) -> (i32, i32) {
    %c0_i32 = arith.constant 0 : i32
    %c0_i32_0 = arith.constant 0 : i32
    %c0_i32_1 = arith.constant 0 : i32
    return %c0_i32, %c0_i32_0 : i32, i32
  }
  func.func @transform_6(%arg0: i32) -> (i32, i32) {
    %c0_i32 = arith.constant 0 : i32
    %c0_i32_0 = arith.constant 0 : i32
    %c0_i32_1 = arith.constant 0 : i32
    return %c0_i32, %c0_i32_0 : i32, i32
  }
  func.func @transform_7(%arg0: i32) -> (i32, i32) {
    %c0_i32 = arith.constant 0 : i32
    %c0_i32_0 = arith.constant 0 : i32
    return %arg0, %c0_i32 : i32, i32
  }
}

module attributes {stable_mosaic.version = 11 : i64} {
  func.func @_mlp_kernel(%arg0: i32, %arg1: memref<128x16xf32, #tpu.memory_space<vmem>>, %arg2: memref<16x32xf32, #tpu.memory_space<vmem>>, %arg3: memref<1x32xf32, #tpu.memory_space<vmem>>, %arg4: memref<32x32xf32, #tpu.memory_space<vmem>>, %arg5: memref<1x32xf32, #tpu.memory_space<vmem>>, %arg6: memref<32x8xf32, #tpu.memory_space<vmem>>, %arg7: memref<1x8xf32, #tpu.memory_space<vmem>>, %arg8: memref<8x128xf32, #tpu.memory_space<vmem>>) attributes {dimension_semantics = [#tpu.dimension_semantics<parallel>], iteration_bounds = array<i64: 1>, scalar_prefetch = 0 : i64, scratch_operands = 0 : i64, tpu.core_type = #tpu.core_type<tc>, window_params = [{transform_indices = @transform_0, window_bounds = array<i64: 128, 16>}, {pipeline_mode = #tpu.pipeline_mode<synchronous>, transform_indices = @transform_1, window_bounds = array<i64: 16, 32>}, {pipeline_mode = #tpu.pipeline_mode<synchronous>, transform_indices = @transform_2, window_bounds = array<i64: 1, 32>}, {pipeline_mode = #tpu.pipeline_mode<synchronous>, transform_indices = @transform_3, window_bounds = array<i64: 32, 32>}, {pipeline_mode = #tpu.pipeline_mode<synchronous>, transform_indices = @transform_4, window_bounds = array<i64: 1, 32>}, {pipeline_mode = #tpu.pipeline_mode<synchronous>, transform_indices = @transform_5, window_bounds = array<i64: 32, 8>}, {pipeline_mode = #tpu.pipeline_mode<synchronous>, transform_indices = @transform_6, window_bounds = array<i64: 1, 8>}, {transform_indices = @transform_7, window_bounds = array<i64: 8, 128>}]} {
    %c0 = arith.constant 0 : index
    %c0_0 = arith.constant 0 : index
    %0 = vector.load %arg1[%c0, %c0_0] : memref<128x16xf32, #tpu.memory_space<vmem>>, vector<128x16xf32>
    %c0_1 = arith.constant 0 : index
    %c0_2 = arith.constant 0 : index
    %1 = vector.load %arg2[%c0_1, %c0_2] : memref<16x32xf32, #tpu.memory_space<vmem>>, vector<16x32xf32>
    %cst = arith.constant dense<0.000000e+00> : vector<128x32xf32>
    %2 = tpu.matmul %0, %1, %cst {dimension_numbers = #tpu.dot_dimension_numbers<[1], [0], [0], [1], [0, 0, 1, 1], [], []>} : vector<128x16xf32>, vector<16x32xf32>, vector<128x32xf32> -> vector<128x32xf32>
    %c0_3 = arith.constant 0 : index
    %c0_4 = arith.constant 0 : index
    %3 = vector.load %arg3[%c0_3, %c0_4] : memref<1x32xf32, #tpu.memory_space<vmem>>, vector<1x32xf32>
    %4 = vector.broadcast %3 : vector<1x32xf32> to vector<128x32xf32>
    %5 = arith.addf %2, %4 : vector<128x32xf32>
    %cst_5 = arith.constant 0.000000e+00 : f32
    %6 = vector.broadcast %cst_5 : f32 to vector<128x32xf32>
    %7 = arith.maximumf %5, %6 : vector<128x32xf32>
    %c0_6 = arith.constant 0 : index
    %c0_7 = arith.constant 0 : index
    %8 = vector.load %arg4[%c0_6, %c0_7] : memref<32x32xf32, #tpu.memory_space<vmem>>, vector<32x32xf32>
    %cst_8 = arith.constant dense<0.000000e+00> : vector<128x32xf32>
    %9 = tpu.matmul %7, %8, %cst_8 {dimension_numbers = #tpu.dot_dimension_numbers<[1], [0], [0], [1], [0, 0, 1, 1], [], []>} : vector<128x32xf32>, vector<32x32xf32>, vector<128x32xf32> -> vector<128x32xf32>
    %c0_9 = arith.constant 0 : index
    %c0_10 = arith.constant 0 : index
    %10 = vector.load %arg5[%c0_9, %c0_10] : memref<1x32xf32, #tpu.memory_space<vmem>>, vector<1x32xf32>
    %11 = vector.broadcast %10 : vector<1x32xf32> to vector<128x32xf32>
    %12 = arith.addf %9, %11 : vector<128x32xf32>
    %cst_11 = arith.constant 0.000000e+00 : f32
    %13 = vector.broadcast %cst_11 : f32 to vector<128x32xf32>
    %14 = arith.maximumf %12, %13 : vector<128x32xf32>
    %c0_12 = arith.constant 0 : index
    %c0_13 = arith.constant 0 : index
    %15 = vector.load %arg6[%c0_12, %c0_13] : memref<32x8xf32, #tpu.memory_space<vmem>>, vector<32x8xf32>
    %cst_14 = arith.constant dense<0.000000e+00> : vector<128x8xf32>
    %16 = tpu.matmul %14, %15, %cst_14 {dimension_numbers = #tpu.dot_dimension_numbers<[1], [0], [0], [1], [0, 0, 1, 1], [], []>} : vector<128x32xf32>, vector<32x8xf32>, vector<128x8xf32> -> vector<128x8xf32>
    %c0_15 = arith.constant 0 : index
    %c0_16 = arith.constant 0 : index
    %17 = vector.load %arg7[%c0_15, %c0_16] : memref<1x8xf32, #tpu.memory_space<vmem>>, vector<1x8xf32>
    %18 = vector.broadcast %17 : vector<1x8xf32> to vector<128x8xf32>
    %19 = arith.addf %16, %18 : vector<128x8xf32>
    %20 = vector.shape_cast %19 : vector<128x8xf32> to vector<8x128xf32>
    %c0_17 = arith.constant 0 : index
    %c0_18 = arith.constant 0 : index
    %21 = vector.load %arg8[%c0_17, %c0_18] : memref<8x128xf32, #tpu.memory_space<vmem>>, vector<8x128xf32>
    tpu.vector_store %arg8[%c0_17, %c0_18], %20 {strides = array<i32>} : memref<8x128xf32, #tpu.memory_space<vmem>>, vector<8x128xf32>,
    return
  }
  func.func @transform_0(%arg0: i32) -> (i32, i32) {
    %c0_i32 = arith.constant 0 : i32
    %c0_i32_0 = arith.constant 0 : i32
    return %arg0, %c0_i32 : i32, i32
  }
  func.func @transform_1(%arg0: i32) -> (i32, i32) {
    %c0_i32 = arith.constant 0 : i32
    %c0_i32_0 = arith.constant 0 : i32
    %c0_i32_1 = arith.constant 0 : i32
    return %c0_i32, %c0_i32_0 : i32, i32
  }
  func.func @transform_2(%arg0: i32) -> (i32, i32) {
    %c0_i32 = arith.constant 0 : i32
    %c0_i32_0 = arith.constant 0 : i32
    %c0_i32_1 = arith.constant 0 : i32
    return %c0_i32, %c0_i32_0 : i32, i32
  }
  func.func @transform_3(%arg0: i32) -> (i32, i32) {
    %c0_i32 = arith.constant 0 : i32
    %c0_i32_0 = arith.constant 0 : i32
    %c0_i32_1 = arith.constant 0 : i32
    return %c0_i32, %c0_i32_0 : i32, i32
  }
  func.func @transform_4(%arg0: i32) -> (i32, i32) {
    %c0_i32 = arith.constant 0 : i32
    %c0_i32_0 = arith.constant 0 : i32
    %c0_i32_1 = arith.constant 0 : i32
    return %c0_i32, %c0_i32_0 : i32, i32
  }
  func.func @transform_5(%arg0: i32) -> (i32, i32) {
    %c0_i32 = arith.constant 0 : i32
    %c0_i32_0 = arith.constant 0 : i32
    %c0_i32_1 = arith.constant 0 : i32
    return %c0_i32, %c0_i32_0 : i32, i32
  }
  func.func @transform_6(%arg0: i32) -> (i32, i32) {
    %c0_i32 = arith.constant 0 : i32
    %c0_i32_0 = arith.constant 0 : i32
    %c0_i32_1 = arith.constant 0 : i32
    return %c0_i32, %c0_i32_0 : i32, i32
  }
  func.func @transform_7(%arg0: i32) -> (i32, i32) {
    %c0_i32 = arith.constant 0 : i32
    %c0_i32_0 = arith.constant 0 : i32
    return %arg0, %c0_i32 : i32, i32
  }
}

module attributes {stable_mosaic.version = 11 : i64} {
  func.func @_mlp_kernel(%arg0: i32, %arg1: memref<16x128xf32, #tpu.memory_space<vmem>>, %arg2: memref<16x32xf32, #tpu.memory_space<vmem>>, %arg3: memref<1x32xf32, #tpu.memory_space<vmem>>, %arg4: memref<32x32xf32, #tpu.memory_space<vmem>>, %arg5: memref<1x32xf32, #tpu.memory_space<vmem>>, %arg6: memref<32x8xf32, #tpu.memory_space<vmem>>, %arg7: memref<1x8xf32, #tpu.memory_space<vmem>>, %arg8: memref<128x8xf32, #tpu.memory_space<vmem>>) attributes {dimension_semantics = [#tpu.dimension_semantics<parallel>], iteration_bounds = array<i64: 1>, scalar_prefetch = 0 : i64, scratch_operands = 0 : i64, tpu.core_type = #tpu.core_type<tc>, window_params = [{transform_indices = @transform_0, window_bounds = array<i64: 16, 128>}, {pipeline_mode = #tpu.pipeline_mode<synchronous>, transform_indices = @transform_1, window_bounds = array<i64: 16, 32>}, {pipeline_mode = #tpu.pipeline_mode<synchronous>, transform_indices = @transform_2, window_bounds = array<i64: 1, 32>}, {pipeline_mode = #tpu.pipeline_mode<synchronous>, transform_indices = @transform_3, window_bounds = array<i64: 32, 32>}, {pipeline_mode = #tpu.pipeline_mode<synchronous>, transform_indices = @transform_4, window_bounds = array<i64: 1, 32>}, {pipeline_mode = #tpu.pipeline_mode<synchronous>, transform_indices = @transform_5, window_bounds = array<i64: 32, 8>}, {pipeline_mode = #tpu.pipeline_mode<synchronous>, transform_indices = @transform_6, window_bounds = array<i64: 1, 8>}, {transform_indices = @transform_7, window_bounds = array<i64: 128, 8>}]} {
    %c0 = arith.constant 0 : index
    %c0_0 = arith.constant 0 : index
    %0 = vector.load %arg1[%c0, %c0_0] : memref<16x128xf32, #tpu.memory_space<vmem>>, vector<16x128xf32>
    %1 = vector.shape_cast %0 : vector<16x128xf32> to vector<128x16xf32>
    %c0_1 = arith.constant 0 : index
    %c0_2 = arith.constant 0 : index
    %2 = vector.load %arg2[%c0_1, %c0_2] : memref<16x32xf32, #tpu.memory_space<vmem>>, vector<16x32xf32>
    %cst = arith.constant dense<0.000000e+00> : vector<128x32xf32>
    %3 = tpu.matmul %1, %2, %cst {dimension_numbers = #tpu.dot_dimension_numbers<[1], [0], [0], [1], [0, 0, 1, 1], [], []>} : vector<128x16xf32>, vector<16x32xf32>, vector<128x32xf32> -> vector<128x32xf32>
    %c0_3 = arith.constant 0 : index
    %c0_4 = arith.constant 0 : index
    %4 = vector.load %arg3[%c0_3, %c0_4] : memref<1x32xf32, #tpu.memory_space<vmem>>, vector<1x32xf32>
    %5 = vector.broadcast %4 : vector<1x32xf32> to vector<128x32xf32>
    %6 = arith.addf %3, %5 : vector<128x32xf32>
    %cst_5 = arith.constant 0.000000e+00 : f32
    %7 = vector.broadcast %cst_5 : f32 to vector<128x32xf32>
    %8 = arith.maximumf %6, %7 : vector<128x32xf32>
    %c0_6 = arith.constant 0 : index
    %c0_7 = arith.constant 0 : index
    %9 = vector.load %arg4[%c0_6, %c0_7] : memref<32x32xf32, #tpu.memory_space<vmem>>, vector<32x32xf32>
    %cst_8 = arith.constant dense<0.000000e+00> : vector<128x32xf32>
    %10 = tpu.matmul %8, %9, %cst_8 {dimension_numbers = #tpu.dot_dimension_numbers<[1], [0], [0], [1], [0, 0, 1, 1], [], []>} : vector<128x32xf32>, vector<32x32xf32>, vector<128x32xf32> -> vector<128x32xf32>
    %c0_9 = arith.constant 0 : index
    %c0_10 = arith.constant 0 : index
    %11 = vector.load %arg5[%c0_9, %c0_10] : memref<1x32xf32, #tpu.memory_space<vmem>>, vector<1x32xf32>
    %12 = vector.broadcast %11 : vector<1x32xf32> to vector<128x32xf32>
    %13 = arith.addf %10, %12 : vector<128x32xf32>
    %cst_11 = arith.constant 0.000000e+00 : f32
    %14 = vector.broadcast %cst_11 : f32 to vector<128x32xf32>
    %15 = arith.maximumf %13, %14 : vector<128x32xf32>
    %c0_12 = arith.constant 0 : index
    %c0_13 = arith.constant 0 : index
    %16 = vector.load %arg6[%c0_12, %c0_13] : memref<32x8xf32, #tpu.memory_space<vmem>>, vector<32x8xf32>
    %cst_14 = arith.constant dense<0.000000e+00> : vector<128x8xf32>
    %17 = tpu.matmul %15, %16, %cst_14 {dimension_numbers = #tpu.dot_dimension_numbers<[1], [0], [0], [1], [0, 0, 1, 1], [], []>} : vector<128x32xf32>, vector<32x8xf32>, vector<128x8xf32> -> vector<128x8xf32>
    %c0_15 = arith.constant 0 : index
    %c0_16 = arith.constant 0 : index
    %18 = vector.load %arg7[%c0_15, %c0_16] : memref<1x8xf32, #tpu.memory_space<vmem>>, vector<1x8xf32>
    %19 = vector.broadcast %18 : vector<1x8xf32> to vector<128x8xf32>
    %20 = arith.addf %17, %19 : vector<128x8xf32>
    %c0_17 = arith.constant 0 : index
    %c0_18 = arith.constant 0 : index
    %21 = vector.load %arg8[%c0_17, %c0_18] : memref<128x8xf32, #tpu.memory_space<vmem>>, vector<128x8xf32>
    tpu.vector_store %arg8[%c0_17, %c0_18], %20 {strides = array<i32>} : memref<128x8xf32, #tpu.memory_space<vmem>>, vector<128x8xf32>,
    return
  }
  func.func @transform_0(%arg0: i32) -> (i32, i32) {
    %c0_i32 = arith.constant 0 : i32
    %c0_i32_0 = arith.constant 0 : i32
    return %arg0, %c0_i32 : i32, i32
  }
  func.func @transform_1(%arg0: i32) -> (i32, i32) {
    %c0_i32 = arith.constant 0 : i32
    %c0_i32_0 = arith.constant 0 : i32
    %c0_i32_1 = arith.constant 0 : i32
    return %c0_i32, %c0_i32_0 : i32, i32
  }
  func.func @transform_2(%arg0: i32) -> (i32, i32) {
    %c0_i32 = arith.constant 0 : i32
    %c0_i32_0 = arith.constant 0 : i32
    %c0_i32_1 = arith.constant 0 : i32
    return %c0_i32, %c0_i32_0 : i32, i32
  }
  func.func @transform_3(%arg0: i32) -> (i32, i32) {
    %c0_i32 = arith.constant 0 : i32
    %c0_i32_0 = arith.constant 0 : i32
    %c0_i32_1 = arith.constant 0 : i32
    return %c0_i32, %c0_i32_0 : i32, i32
  }
  func.func @transform_4(%arg0: i32) -> (i32, i32) {
    %c0_i32 = arith.constant 0 : i32
    %c0_i32_0 = arith.constant 0 : i32
    %c0_i32_1 = arith.constant 0 : i32
    return %c0_i32, %c0_i32_0 : i32, i32
  }
  func.func @transform_5(%arg0: i32) -> (i32, i32) {
    %c0_i32 = arith.constant 0 : i32
    %c0_i32_0 = arith.constant 0 : i32
    %c0_i32_1 = arith.constant 0 : i32
    return %c0_i32, %c0_i32_0 : i32, i32
  }
  func.func @transform_6(%arg0: i32) -> (i32, i32) {
    %c0_i32 = arith.constant 0 : i32
    %c0_i32_0 = arith.constant 0 : i32
    %c0_i32_1 = arith.constant 0 : i32
    return %c0_i32, %c0_i32_0 : i32, i32
  }
  func.func @transform_7(%arg0: i32) -> (i32, i32) {
    %c0_i32 = arith.constant 0 : i32
    %c0_i32_0 = arith.constant 0 : i32
    return %arg0, %c0_i32 : i32, i32
  }
}

module attributes {stable_mosaic.version = 11 : i64} {
  func.func @_mlp_kernel(%arg0: i32, %arg1: memref<128x16xf32, #tpu.memory_space<vmem>>, %arg2: memref<16x32xf32, #tpu.memory_space<vmem>>, %arg3: memref<1x32xf32, #tpu.memory_space<vmem>>, %arg4: memref<32x32xf32, #tpu.memory_space<vmem>>, %arg5: memref<1x32xf32, #tpu.memory_space<vmem>>, %arg6: memref<32x8xf32, #tpu.memory_space<vmem>>, %arg7: memref<1x8xf32, #tpu.memory_space<vmem>>, %arg8: memref<128x8xf32, #tpu.memory_space<vmem>>) attributes {dimension_semantics = [#tpu.dimension_semantics<parallel>], iteration_bounds = array<i64: 1>, scalar_prefetch = 0 : i64, scratch_operands = 0 : i64, tpu.core_type = #tpu.core_type<tc>, window_params = [{transform_indices = @transform_0, window_bounds = array<i64: 128, 16>}, {pipeline_mode = #tpu.pipeline_mode<synchronous>, transform_indices = @transform_1, window_bounds = array<i64: 16, 32>}, {pipeline_mode = #tpu.pipeline_mode<synchronous>, transform_indices = @transform_2, window_bounds = array<i64: 1, 32>}, {pipeline_mode = #tpu.pipeline_mode<synchronous>, transform_indices = @transform_3, window_bounds = array<i64: 32, 32>}, {pipeline_mode = #tpu.pipeline_mode<synchronous>, transform_indices = @transform_4, window_bounds = array<i64: 1, 32>}, {pipeline_mode = #tpu.pipeline_mode<synchronous>, transform_indices = @transform_5, window_bounds = array<i64: 32, 8>}, {pipeline_mode = #tpu.pipeline_mode<synchronous>, transform_indices = @transform_6, window_bounds = array<i64: 1, 8>}, {transform_indices = @transform_7, window_bounds = array<i64: 128, 8>}]} {
    %c0 = arith.constant 0 : index
    %c0_0 = arith.constant 0 : index
    %0 = vector.load %arg1[%c0, %c0_0] : memref<128x16xf32, #tpu.memory_space<vmem>>, vector<128x16xf32>
    %c0_1 = arith.constant 0 : index
    %c0_2 = arith.constant 0 : index
    %1 = vector.load %arg2[%c0_1, %c0_2] : memref<16x32xf32, #tpu.memory_space<vmem>>, vector<16x32xf32>
    %cst = arith.constant dense<0.000000e+00> : vector<128x32xf32>
    %2 = tpu.matmul %0, %1, %cst {dimension_numbers = #tpu.dot_dimension_numbers<[1], [0], [0], [1], [0, 0, 1, 1], [], []>} : vector<128x16xf32>, vector<16x32xf32>, vector<128x32xf32> -> vector<128x32xf32>
    %c0_3 = arith.constant 0 : index
    %c0_4 = arith.constant 0 : index
    %3 = vector.load %arg3[%c0_3, %c0_4] : memref<1x32xf32, #tpu.memory_space<vmem>>, vector<1x32xf32>
    %4 = vector.broadcast %3 : vector<1x32xf32> to vector<128x32xf32>
    %5 = arith.addf %2, %4 : vector<128x32xf32>
    %cst_5 = arith.constant 0.000000e+00 : f32
    %6 = vector.broadcast %cst_5 : f32 to vector<128x32xf32>
    %7 = arith.maximumf %5, %6 : vector<128x32xf32>
    %c0_6 = arith.constant 0 : index
    %c0_7 = arith.constant 0 : index
    %8 = vector.load %arg4[%c0_6, %c0_7] : memref<32x32xf32, #tpu.memory_space<vmem>>, vector<32x32xf32>
    %cst_8 = arith.constant dense<0.000000e+00> : vector<128x32xf32>
    %9 = tpu.matmul %7, %8, %cst_8 {dimension_numbers = #tpu.dot_dimension_numbers<[1], [0], [0], [1], [0, 0, 1, 1], [], []>} : vector<128x32xf32>, vector<32x32xf32>, vector<128x32xf32> -> vector<128x32xf32>
    %c0_9 = arith.constant 0 : index
    %c0_10 = arith.constant 0 : index
    %10 = vector.load %arg5[%c0_9, %c0_10] : memref<1x32xf32, #tpu.memory_space<vmem>>, vector<1x32xf32>
    %11 = vector.broadcast %10 : vector<1x32xf32> to vector<128x32xf32>
    %12 = arith.addf %9, %11 : vector<128x32xf32>
    %cst_11 = arith.constant 0.000000e+00 : f32
    %13 = vector.broadcast %cst_11 : f32 to vector<128x32xf32>
    %14 = arith.maximumf %12, %13 : vector<128x32xf32>
    %c0_12 = arith.constant 0 : index
    %c0_13 = arith.constant 0 : index
    %15 = vector.load %arg6[%c0_12, %c0_13] : memref<32x8xf32, #tpu.memory_space<vmem>>, vector<32x8xf32>
    %cst_14 = arith.constant dense<0.000000e+00> : vector<128x8xf32>
    %16 = tpu.matmul %14, %15, %cst_14 {dimension_numbers = #tpu.dot_dimension_numbers<[1], [0], [0], [1], [0, 0, 1, 1], [], []>} : vector<128x32xf32>, vector<32x8xf32>, vector<128x8xf32> -> vector<128x8xf32>
    %c0_15 = arith.constant 0 : index
    %c0_16 = arith.constant 0 : index
    %17 = vector.load %arg7[%c0_15, %c0_16] : memref<1x8xf32, #tpu.memory_space<vmem>>, vector<1x8xf32>
    %18 = vector.broadcast %17 : vector<1x8xf32> to vector<128x8xf32>
    %19 = arith.addf %16, %18 : vector<128x8xf32>
    %c0_17 = arith.constant 0 : index
    %c0_18 = arith.constant 0 : index
    %20 = vector.load %arg8[%c0_17, %c0_18] : memref<128x8xf32, #tpu.memory_space<vmem>>, vector<128x8xf32>
    tpu.vector_store %arg8[%c0_17, %c0_18], %19 {strides = array<i32>} : memref<128x8xf32, #tpu.memory_space<vmem>>, vector<128x8xf32>,
    return
  }
  func.func @transform_0(%arg0: i32) -> (i32, i32) {
    %c0_i32 = arith.constant 0 : i32
    %c0_i32_0 = arith.constant 0 : i32
    return %arg0, %c0_i32 : i32, i32
  }
  func.func @transform_1(%arg0: i32) -> (i32, i32) {
    %c0_i32 = arith.constant 0 : i32
    %c0_i32_0 = arith.constant 0 : i32
    %c0_i32_1 = arith.constant 0 : i32
    return %c0_i32, %c0_i32_0 : i32, i32
  }
  func.func @transform_2(%arg0: i32) -> (i32, i32) {
    %c0_i32 = arith.constant 0 : i32
    %c0_i32_0 = arith.constant 0 : i32
    %c0_i32_1 = arith.constant 0 : i32
    return %c0_i32, %c0_i32_0 : i32, i32
  }
  func.func @transform_3(%arg0: i32) -> (i32, i32) {
    %c0_i32 = arith.constant 0 : i32
    %c0_i32_0 = arith.constant 0 : i32
    %c0_i32_1 = arith.constant 0 : i32
    return %c0_i32, %c0_i32_0 : i32, i32
  }
  func.func @transform_4(%arg0: i32) -> (i32, i32) {
    %c0_i32 = arith.constant 0 : i32
    %c0_i32_0 = arith.constant 0 : i32
    %c0_i32_1 = arith.constant 0 : i32
    return %c0_i32, %c0_i32_0 : i32, i32
  }
  func.func @transform_5(%arg0: i32) -> (i32, i32) {
    %c0_i32 = arith.constant 0 : i32
    %c0_i32_0 = arith.constant 0 : i32
    %c0_i32_1 = arith.constant 0 : i32
    return %c0_i32, %c0_i32_0 : i32, i32
  }
  func.func @transform_6(%arg0: i32) -> (i32, i32) {
    %c0_i32 = arith.constant 0 : i32
    %c0_i32_0 = arith.constant 0 : i32
    %c0_i32_1 = arith.constant 0 : i32
    return %c0_i32, %c0_i32_0 : i32, i32
  }
  func.func @transform_7(%arg0: i32) -> (i32, i32) {
    %c0_i32 = arith.constant 0 : i32
    %c0_i32_0 = arith.constant 0 : i32
    return %arg0, %c0_i32 : i32, i32
  }
}

</mosaic_0001>

<bundles_post_ra>
// kernel: _forward_impl.1
= control target key start
LH: loop header
LB: loop body
LE: loop exit
PB: predicated region body
PF: predicated region fallthrough
CT: control target
= control target key end

     0   :  { %vm51_vm0 = vcmask 130048   ;;  %vm272_vm1 = vcmask 261120   ;;  %vm686_vm2 = vcmask 64512   ;;  %s1169_s1 = inlined_call_operand.vmem [shape: f32[16,32], index: 1, kind: input, shape index: {}]   ;;  %s1170_s0 = inlined_call_operand.vmem [shape: f32[128,16], index: 0, kind: input, shape index: {}]   ;;  %s1171_s3 = inlined_call_operand.vmem [shape: f32[32,32], index: 3, kind: input, shape index: {}]   ;;  %s1172_s5 = inlined_call_operand.vmem [shape: f32[32,8], index: 5, kind: input, shape index: {}]   ;;  %s1173_s2 = inlined_call_operand.vmem [shape: f32[1,32], index: 2, kind: input, shape index: {}]   ;;  %s1174_s4 = inlined_call_operand.vmem [shape: f32[1,32], index: 4, kind: input, shape index: {}]   ;;  %s1175_s6 = inlined_call_operand.vmem [shape: f32[1,8], index: 6, kind: input, shape index: {}]   ;;  %s1176_s7 = inlined_call_operand.vmem [shape: f32[128,8], index: 7, kind: output, shape index: {}]  }
   0x1   :  { %v42_v0 = vld [vmem:[%s1169_s1] sm:$0xff]  ;;  %v43_v1 = vld [vmem:[%s1169_s1 + $0x8] sm:$0xff]  ;;  %v28_v7 = vld [vmem:[%s1170_s0 + $0x10] sm:$0xff] }
   0x2   :  { %v26_v2 = vld [vmem:[%s1170_s0] sm:$0xff]  ;;  %v908_v3 = vpack.c.bf16 %v43_v1, %v42_v0  ;;  %v27_v5 = vld [vmem:[%s1170_s0 + $0x8] sm:$0xff]  ;;  %v36_v8 = vld [vmem:[%s1170_s0 + $0x50] sm:$0xff] }
   0x3   :  { %820 = vmatprep.mubr.msk.f32.mxu0 %vm51_vm0, %v26_v2  ;;  %v34_v4 = vld [vmem:[%s1170_s0 + $0x40] sm:$0xff]  ;;  %v35_v6 = vld [vmem:[%s1170_s0 + $0x48] sm:$0xff]  ;;  %v263_v11 = vld [vmem:[%s1171_s3 + $0x10] sm:$0xff] }
   0x4   :  { %909 = vmatprep.subr.bf16.mxu0 %v908_v3  ;;  %928 = vmatprep.subr.bf16.mxu1 %v908_v3  ;;  %v261_v9 = vld [vmem:[%s1171_s3] sm:$0xff]  ;;  %v262_v10 = vld [vmem:[%s1171_s3 + $0x8] sm:$0xff]  ;;  %v264_v13 = vld [vmem:[%s1171_s3 + $0x18] sm:$0xff] }
   0x5   :  { %911 = vmatpush3.bf16.msra.mxu0 %v908_v3  ;;  %929 = vmatpush3.bf16.msra.mxu1 %v908_v3  ;;  %v912_v12 = vpack.c.bf16 %v262_v10, %v261_v9  ;;  %v29_v14 = vld [vmem:[%s1170_s0 + $0x18] sm:$0xff]  ;;  %v30_v16 = vld [vmem:[%s1170_s0 + $0x20] sm:$0xff]  ;;  %v916_v18 = vpack.c.bf16 %v264_v13, %v263_v11  ;;  %v31_v19 = vld [vmem:[%s1170_s0 + $0x28] sm:$0xff] }
   0x6   :  { %832 = vmatprep.mubr.msk.f32.mxu1 %vm51_vm0, %v34_v4  ;;  %v37_v15 = vld [vmem:[%s1170_s0 + $0x58] sm:$0xff]  ;;  %v38_v17 = vld [vmem:[%s1170_s0 + $0x60] sm:$0xff]  ;;  %v39_v20 = vld [vmem:[%s1170_s0 + $0x68] sm:$0xff] }
   0x7   :  { %913 = vmatprep.subr.bf16.mxu1 %v912_v12  ;;  %v32_v21 = vld [vmem:[%s1170_s0 + $0x30] sm:$0xff]  ;;  %v33_v23 = vld [vmem:[%s1170_s0 + $0x38] sm:$0xff]  ;;  %v482_v25 = vld [vmem:[%s1172_s5] sm:$0xff] }
   0x8   :  { %821 = vmatmul.mubr.msk.f32.vlgmr.msra.gmra.mrb[0].mxu0 %vm51_vm0, %v27_v5  ;;  %833 = vmatmul.mubr.msk.f32.vlgmr.msra.gmra.mrb[0].mxu1 %vm51_vm0, %v35_v6  ;;  %v40_v22 = vld [vmem:[%s1170_s0 + $0x70] sm:$0xff]  ;;  %v41_v24 = vld [vmem:[%s1170_s0 + $0x78] sm:$0xff]  ;;  %v483_v26 = vld [vmem:[%s1172_s5 + $0x8] sm:$0xff] }
   0x9   :  { %823 = vmatprep.mubr.msk.f32.mxu0 %vm51_vm0, %v28_v7  ;;  %835 = vmatprep.mubr.msk.f32.mxu1 %vm51_vm0, %v36_v8  ;;  %v484_v27 = vld [vmem:[%s1172_s5 + $0x10] sm:$0xff]  ;;  %v920_v28 = vpack.c.bf16 %v483_v26, %v482_v25  ;;  %v485_v29 = vld [vmem:[%s1172_s5 + $0x18] sm:$0xff]  ;;  %v707_v31 = vld [vmem:[%s1173_s2] ss:$0 sm:$0xff] }
   0xa   :  { %915 = vmatpush3.bf16.msra.mxu1 %v912_v12  ;;  %v924_v30 = vpack.c.bf16 %v485_v29, %v484_v27 }
   0xb   :  { %917 = vmatprep.subr.bf16.mxu1 %v916_v18  ;;  %921 = vmatprep.subr.bf16.mxu0 %v920_v28 }
   0xc   :  { %824 = vmatmul.mubr.msk.f32.gmra.mrb[2].mxu0 %vm51_vm0, %v29_v14  ;;  %836 = vmatmul.mubr.msk.f32.gmra.mrb[2].mxu1 %vm51_vm0, %v37_v15 }
   0xd   :  { %826 = vmatprep.mubr.msk.f32.mxu0 %vm51_vm0, %v30_v16  ;;  %838 = vmatprep.mubr.msk.f32.mxu1 %vm51_vm0, %v38_v17  ;;  %v724_v16 = vld [vmem:[%s1174_s4] ss:$0 sm:$0xff] }
   0xe   :  { %919 = vmatpush3.bf16.msra.mxu1 %v916_v18  ;;  %923 = vmatpush3.bf16.msra.mxu0 %v920_v28 }
   0xf   :  { %925 = vmatprep.subr.bf16.mxu0 %v924_v30 }
  0x10   :  { %827 = vmatmul.mubr.msk.f32.gmra.mrb[4].mxu0 %vm51_vm0, %v31_v19  ;;  %839 = vmatmul.mubr.msk.f32.gmra.mrb[4].mxu1 %vm51_vm0, %v39_v20 }
  0x11   :  { %829 = vmatprep.mubr.msk.f32.mxu0 %vm51_vm0, %v32_v21  ;;  %841 = vmatprep.mubr.msk.f32.mxu1 %vm51_vm0, %v40_v22 }
  0x12   :  { %927 = vmatpush3.bf16.msra.mxu0 %v924_v30 }
  0x14   :  { %830 = vmatmul.mubr.msk.f32.gmra.mrb[6].mxu0 %vm51_vm0, %v33_v23  ;;  %842 = vmatmul.mubr.msk.f32.gmra.mrb[6].mxu1 %vm51_vm0, %v41_v24 }
  0xdb   :  { %v822_v32 = vpop.f32.mrb[0].mxu0  ;;  %v834_v33 = vpop.f32.mrb[0].mxu1 }
  0xdc   :  { %v172_v34 = vadd.f32 %v822_v32, %v707_v31  ;;  %v166_v35 = vpop.f32.mrb[1].mxu0  ;;  %v206_v36 = vpop.f32.mrb[1].mxu1  ;;  %v212_v3 = vadd.f32 %v834_v33, %v707_v31 }
  0xdd   :  { %v167_v37 = vadd.f32 %v707_v31, %v166_v35  ;;  %v207_v56 = vadd.f32 %v707_v31, %v206_v36 }
  0xde   :  { %v246_v41 = vmax.f32 %v172_v34, 0.0  ;;  %v254_v6 = vmax.f32 %v212_v3, 0.0 }
  0xdf   :  { %v245_v38 = vmax.f32 %v167_v37, 0.0  ;;  %v825_v39 = vpop.f32.mrb[2].mxu0  ;;  %v837_v40 = vpop.f32.mrb[2].mxu1  ;;  %v253_v0 = vmax.f32 %v207_v56, 0.0 }
  0xe0   :  { %v182_v42 = vadd.f32 %v825_v39, %v707_v31  ;;  %v176_v43 = vpop.f32.mrb[3].mxu0  ;;  %v216_v44 = vpop.f32.mrb[3].mxu1  ;;  %v222_v7 = vadd.f32 %v837_v40, %v707_v31 }
  0xe1   :  { %v177_v45 = vadd.f32 %v707_v31, %v176_v43  ;;  %852 = vmatprep.mubr.msk.f32.mxu1 %vm272_vm1, %v245_v38  ;;  %v217_v1 = vadd.f32 %v707_v31, %v216_v44 }
  0xe2   :  { %853 = vmatmul.mubr.msk.f32.vlgmr.msra.gmra.mrb[8].mxu1 %vm272_vm1, %v246_v41  ;;  %v248_v49 = vmax.f32 %v182_v42, 0.0  ;;  %v256_v10 = vmax.f32 %v222_v7, 0.0 }
  0xe3   :  { %v247_v46 = vmax.f32 %v177_v45, 0.0  ;;  %v828_v47 = vpop.f32.mrb[4].mxu0  ;;  %v840_v48 = vpop.f32.mrb[4].mxu1  ;;  %v255_v4 = vmax.f32 %v217_v1, 0.0  ;;  %v741_v1 = vld [vmem:[%s1175_s6] ss:$0 sm:$0xff] }
  0xe4   :  { %v192_v50 = vadd.f32 %v828_v47, %v707_v31  ;;  %v186_v51 = vpop.f32.mrb[5].mxu0  ;;  %v226_v52 = vpop.f32.mrb[5].mxu1  ;;  %v232_v11 = vadd.f32 %v840_v48, %v707_v31 }
  0xe5   :  { %v187_v53 = vadd.f32 %v707_v31, %v186_v51  ;;  %855 = vmatprep.mubr.msk.f32.mxu1 %vm272_vm1, %v247_v46  ;;  %v227_v5 = vadd.f32 %v707_v31, %v226_v52 }
  0xe6   :  { %856 = vmatmul.mubr.msk.f32.gmra.mrb[10].mxu1 %vm272_vm1, %v248_v49  ;;  %v250_v58 = vmax.f32 %v192_v50, 0.0  ;;  %v258_v13 = vmax.f32 %v232_v11, 0.0 }
  0xe7   :  { %v249_v54 = vmax.f32 %v187_v53, 0.0  ;;  %v831_v55 = vpop.f32.mrb[6].mxu0  ;;  %v843_v57 = vpop.f32.mrb[6].mxu1  ;;  %v257_v8 = vmax.f32 %v227_v5, 0.0 }
  0xe8   :  { %v202_v59 = vadd.f32 %v831_v55, %v707_v31  ;;  %v196_v60 = vpop.f32.mrb[7].mxu0  ;;  %v236_v61 = vpop.f32.mrb[7].mxu1  ;;  %v242_v14 = vadd.f32 %v843_v57, %v707_v31 }
  0xe9   :  { %v197_v62 = vadd.f32 %v707_v31, %v196_v60  ;;  %858 = vmatprep.mubr.msk.f32.mxu1 %vm272_vm1, %v249_v54  ;;  %v237_v9 = vadd.f32 %v707_v31, %v236_v61 }
  0xea   :  { %859 = vmatmul.mubr.msk.f32.gmra.mrb[12].mxu1 %vm272_vm1, %v250_v58  ;;  %v252_v2 = vmax.f32 %v202_v59, 0.0  ;;  %v260_v15 = vmax.f32 %v242_v14, 0.0 }
  0xeb   :  { %v251_v63 = vmax.f32 %v197_v62, 0.0  ;;  %v259_v12 = vmax.f32 %v237_v9, 0.0 }
  0xed   :  { %861 = vmatprep.mubr.msk.f32.mxu1 %vm272_vm1, %v251_v63 }
  0xee   :  { %862 = vmatmul.mubr.msk.f32.gmra.mrb[14].mxu1 %vm272_vm1, %v252_v2 }
  0xef   :  { %864 = vmatprep.mubr.msk.f32.mxu1 %vm272_vm1, %v253_v0 }
  0xf2   :  { %865 = vmatmul.mubr.msk.f32.gmra.mrb[16].mxu1 %vm272_vm1, %v254_v6 }
  0xf3   :  { %867 = vmatprep.mubr.msk.f32.mxu1 %vm272_vm1, %v255_v4 }
  0xf6   :  { %868 = vmatmul.mubr.msk.f32.gmra.mrb[18].mxu1 %vm272_vm1, %v256_v10 }
  0xf7   :  { %870 = vmatprep.mubr.msk.f32.mxu1 %vm272_vm1, %v257_v8 }
  0xfa   :  { %871 = vmatmul.mubr.msk.f32.gmra.mrb[20].mxu1 %vm272_vm1, %v258_v13 }
  0xfb   :  { %873 = vmatprep.mubr.msk.f32.mxu1 %vm272_vm1, %v259_v12 }
  0xfe   :  { %874 = vmatmul.mubr.msk.f32.gmra.mrb[22].mxu1 %vm272_vm1, %v260_v15 }
 0x1b5   :  { %v854_v17 = vpop.f32.mrb[8].mxu1 }
 0x1b6   :  { %v393_v18 = vadd.f32 %v854_v17, %v724_v16  ;;  %v387_v19 = vpop.f32.mrb[9].mxu1 }
 0x1b7   :  { %v388_v20 = vadd.f32 %v724_v16, %v387_v19 }
 0x1b8   :  { %v467_v23 = vmax.f32 %v393_v18, 0.0 }
 0x1b9   :  { %v466_v21 = vmax.f32 %v388_v20, 0.0  ;;  %v857_v22 = vpop.f32.mrb[10].mxu1 }
 0x1ba   :  { %v403_v24 = vadd.f32 %v857_v22, %v724_v16  ;;  %v397_v25 = vpop.f32.mrb[11].mxu1 }
 0x1bb   :  { %v398_v26 = vadd.f32 %v724_v16, %v397_v25  ;;  %884 = vmatprep.mubr.msk.f32.mxu0 %vm272_vm1, %v466_v21 }
 0x1bc   :  { %885 = vmatmul.mubr.msk.f32.vlgmr.msra.gmra.mrb[8].mxu0 %vm272_vm1, %v467_v23  ;;  %v469_v29 = vmax.f32 %v403_v24, 0.0 }
 0x1bd   :  { %v468_v27 = vmax.f32 %v398_v26, 0.0  ;;  %v860_v28 = vpop.f32.mrb[12].mxu1 }
 0x1be   :  { %v413_v30 = vadd.f32 %v860_v28, %v724_v16  ;;  %v407_v31 = vpop.f32.mrb[13].mxu1 }
 0x1bf   :  { %v408_v32 = vadd.f32 %v724_v16, %v407_v31  ;;  %887 = vmatprep.mubr.msk.f32.mxu0 %vm272_vm1, %v468_v27 }
 0x1c0   :  { %888 = vmatmul.mubr.msk.f32.gmra.mrb[10].mxu0 %vm272_vm1, %v469_v29  ;;  %v471_v35 = vmax.f32 %v413_v30, 0.0 }
 0x1c1   :  { %v470_v33 = vmax.f32 %v408_v32, 0.0  ;;  %v863_v34 = vpop.f32.mrb[14].mxu1 }
 0x1c2   :  { %v423_v36 = vadd.f32 %v863_v34, %v724_v16  ;;  %v417_v37 = vpop.f32.mrb[15].mxu1 }
 0x1c3   :  { %v418_v38 = vadd.f32 %v724_v16, %v417_v37  ;;  %890 = vmatprep.mubr.msk.f32.mxu0 %vm272_vm1, %v470_v33 }
 0x1c4   :  { %891 = vmatmul.mubr.msk.f32.gmra.mrb[12].mxu0 %vm272_vm1, %v471_v35  ;;  %v473_v41 = vmax.f32 %v423_v36, 0.0 }
 0x1c5   :  { %v472_v39 = vmax.f32 %v418_v38, 0.0  ;;  %v866_v40 = vpop.f32.mrb[16].mxu1 }
 0x1c6   :  { %v433_v42 = vadd.f32 %v866_v40, %v724_v16  ;;  %v427_v43 = vpop.f32.mrb[17].mxu1 }
 0x1c7   :  { %v428_v44 = vadd.f32 %v724_v16, %v427_v43  ;;  %893 = vmatprep.mubr.msk.f32.mxu0 %vm272_vm1, %v472_v39 }
 0x1c8   :  { %894 = vmatmul.mubr.msk.f32.gmra.mrb[14].mxu0 %vm272_vm1, %v473_v41  ;;  %v475_v47 = vmax.f32 %v433_v42, 0.0 }
 0x1c9   :  { %v474_v45 = vmax.f32 %v428_v44, 0.0  ;;  %v869_v46 = vpop.f32.mrb[18].mxu1 }
 0x1ca   :  { %v443_v48 = vadd.f32 %v869_v46, %v724_v16  ;;  %v437_v49 = vpop.f32.mrb[19].mxu1 }
 0x1cb   :  { %v438_v50 = vadd.f32 %v724_v16, %v437_v49  ;;  %896 = vmatprep.mubr.msk.f32.mxu0 %vm272_vm1, %v474_v45 }
 0x1cc   :  { %897 = vmatmul.mubr.msk.f32.gmra.mrb[16].mxu0 %vm272_vm1, %v475_v47  ;;  %v477_v53 = vmax.f32 %v443_v48, 0.0 }
 0x1cd   :  { %v476_v51 = vmax.f32 %v438_v50, 0.0  ;;  %v872_v52 = vpop.f32.mrb[20].mxu1 }
 0x1ce   :  { %v453_v54 = vadd.f32 %v872_v52, %v724_v16  ;;  %v447_v55 = vpop.f32.mrb[21].mxu1 }
 0x1cf   :  { %v448_v56 = vadd.f32 %v724_v16, %v447_v55  ;;  %899 = vmatprep.mubr.msk.f32.mxu0 %vm272_vm1, %v476_v51 }
 0x1d0   :  { %900 = vmatmul.mubr.msk.f32.gmra.mrb[18].mxu0 %vm272_vm1, %v477_v53  ;;  %v479_v59 = vmax.f32 %v453_v54, 0.0 }
 0x1d1   :  { %v478_v57 = vmax.f32 %v448_v56, 0.0  ;;  %v875_v58 = vpop.f32.mrb[22].mxu1 }
 0x1d2   :  { %v463_v60 = vadd.f32 %v875_v58, %v724_v16  ;;  %v457_v61 = vpop.f32.mrb[23].mxu1 }
 0x1d3   :  { %v458_v62 = vadd.f32 %v724_v16, %v457_v61  ;;  %902 = vmatprep.mubr.msk.f32.mxu0 %vm272_vm1, %v478_v57 }
 0x1d4   :  { %903 = vmatmul.mubr.msk.f32.gmra.mrb[20].mxu0 %vm272_vm1, %v479_v59  ;;  %v481_v0 = vmax.f32 %v463_v60, 0.0 }
 0x1d5   :  { %v480_v63 = vmax.f32 %v458_v62, 0.0 }
 0x1d7   :  { %905 = vmatprep.mubr.msk.f32.mxu0 %vm272_vm1, %v480_v63 }
 0x1d8   :  { %906 = vmatmul.mubr.msk.f32.gmra.mrb[22].mxu0 %vm272_vm1, %v481_v0 }
 0x28f   :  { %v886_v2 = vpop.f32.mrb[8].mxu0 }
 0x290   :  { %v613_v3 = vadd.f32 %v886_v2, %v741_v1  ;;  %v607_v4 = vpop.f32.mrb[9].mxu0 }
 0x291   :  { %v608_v5 = vadd.f32 %v741_v1, %v607_v4 }
 0x292   :  { %688 = vst.msk [vmem:[%s1176_s7 + $0x8] sm:$0xff] %vm686_vm2, %v613_v3 }
 0x293   :  { %687 = vst.msk [vmem:[%s1176_s7] sm:$0xff] %vm686_vm2, %v608_v5  ;;  %v889_v6 = vpop.f32.mrb[10].mxu0 }
 0x294   :  { %v623_v7 = vadd.f32 %v889_v6, %v741_v1  ;;  %v617_v8 = vpop.f32.mrb[11].mxu0 }
 0x295   :  { %v618_v9 = vadd.f32 %v741_v1, %v617_v8 }
 0x296   :  { %690 = vst.msk [vmem:[%s1176_s7 + $0x18] sm:$0xff] %vm686_vm2, %v623_v7 }
 0x297   :  { %689 = vst.msk [vmem:[%s1176_s7 + $0x10] sm:$0xff] %vm686_vm2, %v618_v9  ;;  %v892_v10 = vpop.f32.mrb[12].mxu0 }
 0x298   :  { %v633_v11 = vadd.f32 %v892_v10, %v741_v1  ;;  %v627_v12 = vpop.f32.mrb[13].mxu0 }
 0x299   :  { %v628_v13 = vadd.f32 %v741_v1, %v627_v12 }
 0x29a   :  { %692 = vst.msk [vmem:[%s1176_s7 + $0x28] sm:$0xff] %vm686_vm2, %v633_v11 }
 0x29b   :  { %691 = vst.msk [vmem:[%s1176_s7 + $0x20] sm:$0xff] %vm686_vm2, %v628_v13  ;;  %v895_v14 = vpop.f32.mrb[14].mxu0 }
 0x29c   :  { %v643_v15 = vadd.f32 %v895_v14, %v741_v1  ;;  %v637_v16 = vpop.f32.mrb[15].mxu0 }
 0x29d   :  { %v638_v17 = vadd.f32 %v741_v1, %v637_v16 }
 0x29e   :  { %694 = vst.msk [vmem:[%s1176_s7 + $0x38] sm:$0xff] %vm686_vm2, %v643_v15 }
 0x29f   :  { %693 = vst.msk [vmem:[%s1176_s7 + $0x30] sm:$0xff] %vm686_vm2, %v638_v17  ;;  %v898_v18 = vpop.f32.mrb[16].mxu0 }
 0x2a0   :  { %v653_v19 = vadd.f32 %v898_v18, %v741_v1  ;;  %v647_v20 = vpop.f32.mrb[17].mxu0 }
 0x2a1   :  { %v648_v21 = vadd.f32 %v741_v1, %v647_v20 }
 0x2a2   :  { %696 = vst.msk [vmem:[%s1176_s7 + $0x48] sm:$0xff] %vm686_vm2, %v653_v19 }
 0x2a3   :  { %695 = vst.msk [vmem:[%s1176_s7 + $0x40] sm:$0xff] %vm686_vm2, %v648_v21  ;;  %v901_v22 = vpop.f32.mrb[18].mxu0 }
 0x2a4   :  { %v663_v23 = vadd.f32 %v901_v22, %v741_v1  ;;  %v657_v24 = vpop.f32.mrb[19].mxu0 }
 0x2a5   :  { %v658_v25 = vadd.f32 %v741_v1, %v657_v24 }
 0x2a6   :  { %698 = vst.msk [vmem:[%s1176_s7 + $0x58] sm:$0xff] %vm686_vm2, %v663_v23 }
 0x2a7   :  { %697 = vst.msk [vmem:[%s1176_s7 + $0x50] sm:$0xff] %vm686_vm2, %v658_v25  ;;  %v904_v26 = vpop.f32.mrb[20].mxu0 }
 0x2a8   :  { %v673_v27 = vadd.f32 %v904_v26, %v741_v1  ;;  %v667_v28 = vpop.f32.mrb[21].mxu0 }
 0x2a9   :  { %v668_v29 = vadd.f32 %v741_v1, %v667_v28 }
 0x2aa   :  { %700 = vst.msk [vmem:[%s1176_s7 + $0x68] sm:$0xff] %vm686_vm2, %v673_v27 }
 0x2ab   :  { %699 = vst.msk [vmem:[%s1176_s7 + $0x60] sm:$0xff] %vm686_vm2, %v668_v29  ;;  %v907_v30 = vpop.f32.mrb[22].mxu0 }
 0x2ac   :  { %v683_v31 = vadd.f32 %v907_v30, %v741_v1  ;;  %v677_v32 = vpop.f32.mrb[23].mxu0 }
 0x2ad   :  { %v678_v33 = vadd.f32 %v741_v1, %v677_v32 }
 0x2ae   :  { %702 = vst.msk [vmem:[%s1176_s7 + $0x78] sm:$0xff] %vm686_vm2, %v683_v31 }
 0x2af   :  { %701 = vst.msk [vmem:[%s1176_s7 + $0x70] sm:$0xff] %vm686_vm2, %v678_v33 }

</bundles_post_ra>
